<compile_context>
chip_gen: v7x
topology: tpu7x:2x2x1
jax: 0.10.0
libtpu: 0.0.40
codegen_flags: <defaults>
</compile_context>

<pallas_src>
import functools

import jax
import jax.numpy as jnp
from jax import lax
from jax.experimental import pallas as pl
from jax.experimental.pallas import tpu as pltpu


_LANE = 128
_CHUNK = 512   # lanes per inner compute chunk: (C=32, 512) f32 acc = 16 vregs -> no spills


def _round_up(x, m):
    return ((x + m - 1) // m) * m


# ---------------------------------------------------------------------------
# Fused Pallas kernel: backbone 3x3/s2 conv (as tap matmul) + counting head
# ---------------------------------------------------------------------------
def _fused_counting_kernel(pT_ref, w0T_ref, b0_ref, emb_ref, w1_ref, b1_ref, o_ref):
    # pT_ref : (K32, tm)  bf16   im2col patches (transposed layout, lanes = spatial)
    # w0T_ref: (C, K32)   bf16   backbone conv weight (transposed)
    # b0_ref : (C, 1)     f32    backbone conv bias
    # emb_ref: (C, 1)     f32    per-batch box embedding (precomputed in wrapper)
    # w1_ref : (C, 1)     f32    head 1x1 conv weight
    # b1_ref : (1,)       f32    head 1x1 conv bias (SMEM scalar)
    # o_ref  : (1, tm)    f32    counting-map row block (lane-dense)
    tm = o_ref.shape[-1]
    chunk = min(_CHUNK, tm)          # static; tm is a multiple of chunk by construction

    w0T = w0T_ref[...]               # tiny resident operands, loaded once per block
    b0 = b0_ref[...]
    emb = emb_ref[...]
    w1 = w1_ref[...]
    b1 = b1_ref[0]

    # Statically unrolled chunk loop: keeps the (C, chunk) f32 intermediates inside the
    # vreg file (no VMEM spill traffic) while tm stays large (up to 16K lanes) to amortize
    # the ~0.35us per-grid-step overhead.
    for ci in range(tm // chunk):
        s = ci * chunk                                           # static -> zero-cost ref view
        acc = jnp.dot(w0T, pT_ref[:, s:s + chunk],
                      preferred_element_type=jnp.float32)        # (C, chunk) on the MXU
        z = jnp.maximum(acc + b0, 0.0)                           # conv bias + ReLU
        y = jnp.maximum(z + emb, 0.0)                            # box-emb modulation + ReLU
        o_ref[:, s:s + chunk] = jnp.sum(y * w1, axis=0, keepdims=True) + b1


# ---------------------------------------------------------------------------
# pallas_call wrapper
# ---------------------------------------------------------------------------
def fused_counting_call(patchesT, w0T, b0_col, emb_col, w1_col, b1_vec, tm):
    B, K32, n_pad = patchesT.shape
    C = w0T.shape[0]
    n_blocks = n_pad // tm
    return pl.pallas_call(
        _fused_counting_kernel,
        out_shape=jax.ShapeDtypeStruct((B, 1, n_pad), jnp.float32),
        grid_spec=pltpu.PrefetchScalarGridSpec(
            num_scalar_prefetch=0,
            grid=(B, n_blocks),
            in_specs=[
                pl.BlockSpec((None, K32, tm), lambda b, i: (b, 0, i)),   # patches (bf16)
                pl.BlockSpec((C, K32), lambda b, i: (0, 0)),             # conv weight (resident)
                pl.BlockSpec((C, 1), lambda b, i: (0, 0)),               # conv bias (resident)
                pl.BlockSpec((None, C, 1), lambda b, i: (b, 0, 0)),      # per-batch box emb
                pl.BlockSpec((C, 1), lambda b, i: (0, 0)),               # 1x1 conv weight
                pl.BlockSpec(memory_space=pltpu.MemorySpace.SMEM),       # 1x1 conv bias
            ],
            out_specs=pl.BlockSpec((None, 1, tm), lambda b, i: (b, 0, i)),
        ),
        compiler_params=pltpu.CompilerParams(
            dimension_semantics=("parallel", "parallel"),
        ),
    )(patchesT, w0T, b0_col, emb_col, w1_col, b1_vec)


# ---------------------------------------------------------------------------
# Glue (plain JAX)
# ---------------------------------------------------------------------------
def _default_tile_cap():
    """Per-generation lane-tile cap (bigger tiles amortize grid-step overhead)."""
    try:
        kind = jax.devices()[0].device_kind.lower()
    except Exception:
        return 8192
    if "v7" in kind:
        return 16384        # 32*16384*2 B patch block (~1 MiB) x2 buffers << 64 MiB VMEM
    if "v5 lite" in kind or "v5e" in kind or "v5lite" in kind:
        return 4096
    return 8192


def _choose_tile(n, batch, cap):
    """Lane tile for the spatial axis: multiple of 128 (and of _CHUNK when > _CHUNK)."""
    n128 = _round_up(max(n, 1), _LANE)
    if n128 <= _CHUNK:
        tm = n128
    else:
        tm = min(cap, _round_up(n128, _CHUNK))
    # Ensure >= 2 grid steps when possible so megacore (v7x) can shard work across both TCs.
    if batch * (_round_up(n128, tm) // tm) < 2 and tm > _LANE:
        half = _round_up((n128 + 1) // 2, _LANE)
        tm = half if half <= _CHUNK else _round_up(half, _CHUNK)
    n_pad = _round_up(n128, tm)
    return tm, n_pad


def _im2col_transposed_padded(image_padded, k_pad, ksize=3, stride=2):
    """[B, Cin, Hp, Wp] (conv-padded, bf16) -> ([B, k_pad, Ho*Wo], Ho, Wo).

    Tap order is (kh, kw, cin); zero taps are appended up to k_pad inside the same stack,
    so the amplified patch array is materialized exactly once, already in bf16.
    """
    B, Cin, Hp, Wp = image_padded.shape
    Ho = (Hp - ksize) // stride + 1
    Wo = (Wp - ksize) // stride + 1
    taps = []
    for dh in range(ksize):
        for dw in range(ksize):
            for cin in range(Cin):
                taps.append(image_padded[:, cin,
                                         dh:dh + stride * Ho:stride,
                                         dw:dw + stride * Wo:stride])
    zero = jnp.zeros((B, Ho, Wo), image_padded.dtype)
    taps.extend([zero] * (k_pad - len(taps)))
    pt = jnp.stack(taps, axis=1).reshape(B, k_pad, Ho * Wo)   # reshape is a free bitcast
    return pt, Ho, Wo


def single_scale_encoder_decoder_counting(x, ext_info, params, stride=2):
    """x: [B, Cx, H, W] (Cx >= 3); ext_info: [B, E] (E >= 5).

    Returns {'predict_counting_map': [B, 1, H//stride, W//stride]} (NCHW).
    """
    image = x[:, 0:3].astype(jnp.float32)                 # x[:, 0:3]
    example_box = ext_info[:, :5].astype(jnp.float32)     # ext_info[:, :5, ...]
    B = image.shape[0]

    K, C = params["w0"].shape                             # K = 3*3*3 = 27
    K32 = _round_up(K, 8)                                 # zero taps folded into the stack below

    # ---- per-batch box embedding (tiny B x C), computed once outside the kernel ----
    emb = example_box @ params["we"] + params["be"]       # [B, C]
    emb_col = emb[:, :, None]                             # [B, C, 1]

    # ---- im2col glue: bf16 cast + conv pad BEFORE tap extraction; single materialization ----
    img_p = jnp.pad(image.astype(jnp.bfloat16), ((0, 0), (0, 0), (1, 1), (1, 1)))
    patchesT, Ho, Wo = _im2col_transposed_padded(img_p, K32, ksize=3, stride=stride)
    N = Ho * Wo

    tm, n_pad = _choose_tile(N, B, _default_tile_cap())
    if n_pad != N:                                        # only for sizes that don't divide tm
        patchesT = jnp.pad(patchesT, ((0, 0), (0, 0), (0, n_pad - N)))

    w0T = jnp.transpose(jnp.pad(params["w0"], ((0, K32 - K), (0, 0)))).astype(jnp.bfloat16)
    b0_col = jnp.transpose(params["b0"])                  # [C, 1]
    w1_col = params["w1"]                                 # [C, 1]
    b1_vec = params["b1"].reshape(1)                      # (1,) SMEM scalar

    cmap = fused_counting_call(patchesT, w0T, b0_col, emb_col, w1_col, b1_vec, tm)
    # Padded lanes (N..n_pad) hold a benign constant; the slice keeps semantics exact.
    predict_counting_map = cmap[:, :, :N].reshape(B, 1, Ho, Wo)          # NCHW
    return {"predict_counting_map": predict_counting_map}


# ---------------------------------------------------------------------------
# Pure-JAX reference (same bf16 rounding on the conv operands)
# ---------------------------------------------------------------------------
def _reference(x, ext_info, params):
    image = x[:, 0:3].astype(jnp.float32)
    box = ext_info[:, :5].astype(jnp.float32)
    img = image.astype(jnp.bfloat16).astype(jnp.float32)
    w0 = params["w0"].astype(jnp.bfloat16).astype(jnp.float32)
    C = w0.shape[1]
    img_nhwc = jnp.transpose(img, (0, 2, 3, 1))
    w_hwio = w0.reshape(3, 3, 3, C)                        # (kh, kw, cin, cout)
    z = lax.conv_general_dilated(
        img_nhwc, w_hwio, window_strides=(2, 2), padding=((1, 1), (1, 1)),
        dimension_numbers=("NHWC", "HWIO", "NHWC"))
    z = jnp.maximum(z + params["b0"][0], 0.0)              # [B, Ho, Wo, C]
    emb = box @ params["we"] + params["be"][0]             # [B, C]
    y = jnp.maximum(z + emb[:, None, None, :], 0.0)
    out = jnp.sum(y * params["w1"][:, 0], axis=-1, keepdims=True) + params["b1"][0]
    return jnp.transpose(out, (0, 3, 1, 2))                # NCHW [B, 1, Ho, Wo]


# ---------------------------------------------------------------------------
# Deterministic parameter init
# ---------------------------------------------------------------------------
def init_params(key, cin=3, cfeat=32, box_dim=5, ksize=3):
    k0, k1, k2, _ = jax.random.split(key, 4)
    K = ksize * ksize * cin
    return {
        "w0": jax.random.normal(k0, (K, cfeat), jnp.float32) * 0.1,
        "b0": jnp.zeros((1, cfeat), jnp.float32) + 0.01,
        "we": jax.random.normal(k1, (box_dim, cfeat), jnp.float32) * 0.1,
        "be": jnp.zeros((1, cfeat), jnp.float32),
        "w1": jax.random.normal(k2, (cfeat, 1), jnp.float32) * 0.1,
        "b1": jnp.zeros((1, 1), jnp.float32) + 0.05,
    }


if __name__ == "__main__":
    key = jax.random.PRNGKey(0)
    kx, ke, kp = jax.random.split(key, 3)

    B, Cx, H, W = 2, 4, 16, 16
    x = jax.random.normal(kx, (B, Cx, H, W), jnp.float32)
    ext_info = jax.random.uniform(ke, (B, 6), jnp.float32)   # sliced to [:, :5]

    params = init_params(kp)

    fwd = jax.jit(functools.partial(single_scale_encoder_decoder_counting, params=params))
    out_dict = fwd(x, ext_info)
    cmap = jax.block_until_ready(out_dict["predict_counting_map"])

    assert cmap.shape == (B, 1, H // 2, W // 2), cmap.shape

    ref = _reference(x, ext_info, params)
    max_err = float(jnp.max(jnp.abs(cmap - ref)))
    assert jnp.allclose(cmap, ref, atol=2e-3, rtol=2e-3), max_err

    # TODO(synk): sliding_window_infer / _map_to_points (local-max extraction with numpy
    # boolean indexing) are inference-time post-processing, not part of forward(); omitted.
    print("KERNEL_OK")
</pallas_src>

<mosaic_0001>
module attributes {stable_mosaic.version = 11 : i64} {
  func.func @_fused_counting_kernel(%arg0: i32, %arg1: i32, %arg2: memref<1x32x128xbf16, #tpu.memory_space<vmem>>, %arg3: memref<32x32xbf16, #tpu.memory_space<vmem>>, %arg4: memref<32x1xf32, #tpu.memory_space<vmem>>, %arg5: memref<1x32x1xf32, #tpu.memory_space<vmem>>, %arg6: memref<32x1xf32, #tpu.memory_space<vmem>>, %arg7: memref<1xf32, #tpu.memory_space<smem>>, %arg8: memref<1x1x128xf32, #tpu.memory_space<vmem>>) attributes {dimension_semantics = [#tpu.dimension_semantics<parallel>, #tpu.dimension_semantics<parallel>], iteration_bounds = array<i64: 2, 1>, scalar_prefetch = 0 : i64, scratch_operands = 0 : i64, tpu.core_type = #tpu.core_type<tc>, window_params = [{transform_indices = @transform_0, window_bounds = array<i64: 1, 32, 128>}, {pipeline_mode = #tpu.pipeline_mode<synchronous>, transform_indices = @transform_1, window_bounds = array<i64: 32, 32>}, {pipeline_mode = #tpu.pipeline_mode<synchronous>, transform_indices = @transform_2, window_bounds = array<i64: 32, 1>}, {transform_indices = @transform_3, window_bounds = array<i64: 1, 32, 1>}, {pipeline_mode = #tpu.pipeline_mode<synchronous>, transform_indices = @transform_4, window_bounds = array<i64: 32, 1>}, {transform_indices = @transform_5, window_bounds = array<i64: 1>}, {transform_indices = @transform_6, window_bounds = array<i64: 1, 1, 128>}]} {
    %c0 = arith.constant 0 : index
    %c0_0 = arith.constant 0 : index
    %0 = vector.load %arg3[%c0, %c0_0] : memref<32x32xbf16, #tpu.memory_space<vmem>>, vector<32x32xbf16>
    %c0_1 = arith.constant 0 : index
    %c0_2 = arith.constant 0 : index
    %1 = vector.load %arg4[%c0_1, %c0_2] : memref<32x1xf32, #tpu.memory_space<vmem>>, vector<32x1xf32>
    %c0_3 = arith.constant 0 : index
    %c0_4 = arith.constant 0 : index
    %c0_5 = arith.constant 0 : index
    %2 = vector.load %arg5[%c0_3, %c0_4, %c0_5] : memref<1x32x1xf32, #tpu.memory_space<vmem>>, vector<1x32x1xf32>
    %3 = vector.shape_cast %2 : vector<1x32x1xf32> to vector<32x1xf32>
    %c0_6 = arith.constant 0 : index
    %c0_7 = arith.constant 0 : index
    %4 = vector.load %arg6[%c0_6, %c0_7] : memref<32x1xf32, #tpu.memory_space<vmem>>, vector<32x1xf32>
    %c0_8 = arith.constant 0 : index
    %5 = memref.load %arg7[%c0_8] : memref<1xf32, #tpu.memory_space<smem>>
    %c0_9 = arith.constant 0 : index
    %c0_10 = arith.constant 0 : index
    %c0_11 = arith.constant 0 : index
    %6 = vector.load %arg2[%c0_9, %c0_10, %c0_11] : memref<1x32x128xbf16, #tpu.memory_space<vmem>>, vector<1x32x128xbf16>
    %7 = vector.shape_cast %6 : vector<1x32x128xbf16> to vector<32x128xbf16>
    %cst = arith.constant dense<0.000000e+00> : vector<32x128xf32>
    %8 = tpu.matmul %0, %7, %cst {dimension_numbers = #tpu.dot_dimension_numbers<[1], [0], [0], [1], [0, 0, 1, 1], [], []>} : vector<32x32xbf16>, vector<32x128xbf16>, vector<32x128xf32> -> vector<32x128xf32>
    %9 = vector.broadcast %1 : vector<32x1xf32> to vector<32x128xf32>
    %10 = arith.addf %8, %9 : vector<32x128xf32>
    %cst_12 = arith.constant 0.000000e+00 : f32
    %11 = vector.broadcast %cst_12 : f32 to vector<32x128xf32>
    %12 = arith.maximumf %10, %11 : vector<32x128xf32>
    %13 = vector.broadcast %3 : vector<32x1xf32> to vector<32x128xf32>
    %14 = arith.addf %12, %13 : vector<32x128xf32>
    %cst_13 = arith.constant 0.000000e+00 : f32
    %15 = vector.broadcast %cst_13 : f32 to vector<32x128xf32>
    %16 = arith.maximumf %14, %15 : vector<32x128xf32>
    %17 = vector.broadcast %4 : vector<32x1xf32> to vector<32x128xf32>
    %18 = arith.mulf %16, %17 : vector<32x128xf32>
    %cst_14 = arith.constant dense<0.000000e+00> : vector<128xf32>
    %19 = vector.multi_reduction <add>, %18, %cst_14 [0] : vector<32x128xf32> to vector<128xf32>
    %20 = vector.shape_cast %19 : vector<128xf32> to vector<1x128xf32>
    %21 = vector.broadcast %5 : f32 to vector<1x128xf32>
    %22 = arith.addf %20, %21 : vector<1x128xf32>
    %c0_15 = arith.constant 0 : index
    %c0_16 = arith.constant 0 : index
    %c0_17 = arith.constant 0 : index
    %23 = vector.load %arg8[%c0_15, %c0_16, %c0_17] : memref<1x1x128xf32, #tpu.memory_space<vmem>>, vector<1x1x128xf32>
    %24 = vector.shape_cast %23 : vector<1x1x128xf32> to vector<1x128xf32>
    %25 = vector.shape_cast %22 : vector<1x128xf32> to vector<1x1x128xf32>
    tpu.vector_store %arg8[%c0_15, %c0_16, %c0_17], %25 {strides = array<i32>} : memref<1x1x128xf32, #tpu.memory_space<vmem>>, vector<1x1x128xf32>,
    return
  }
  func.func @transform_0(%arg0: i32, %arg1: i32) -> (i32, i32, i32) {
    %c0_i32 = arith.constant 0 : i32
    %c0_i32_0 = arith.constant 0 : i32
    return %arg0, %c0_i32, %arg1 : i32, i32, i32
  }
  func.func @transform_1(%arg0: i32, %arg1: i32) -> (i32, i32) {
    %c0_i32 = arith.constant 0 : i32
    %c0_i32_0 = arith.constant 0 : i32
    %c0_i32_1 = arith.constant 0 : i32
    return %c0_i32, %c0_i32_0 : i32, i32
  }
  func.func @transform_2(%arg0: i32, %arg1: i32) -> (i32, i32) {
    %c0_i32 = arith.constant 0 : i32
    %c0_i32_0 = arith.constant 0 : i32
    %c0_i32_1 = arith.constant 0 : i32
    return %c0_i32, %c0_i32_0 : i32, i32
  }
  func.func @transform_3(%arg0: i32, %arg1: i32) -> (i32, i32, i32) {
    %c0_i32 = arith.constant 0 : i32
    %c0_i32_0 = arith.constant 0 : i32
    %c0_i32_1 = arith.constant 0 : i32
    return %arg0, %c0_i32, %c0_i32_0 : i32, i32, i32
  }
  func.func @transform_4(%arg0: i32, %arg1: i32) -> (i32, i32) {
    %c0_i32 = arith.constant 0 : i32
    %c0_i32_0 = arith.constant 0 : i32
    %c0_i32_1 = arith.constant 0 : i32
    return %c0_i32, %c0_i32_0 : i32, i32
  }
  func.func @transform_5(%arg0: i32, %arg1: i32) -> i32 {
    %c0_i32 = arith.constant 0 : i32
    %c0_i32_0 = arith.constant 0 : i32
    return %c0_i32 : i32
  }
  func.func @transform_6(%arg0: i32, %arg1: i32) -> (i32, i32, i32) {
    %c0_i32 = arith.constant 0 : i32
    %c0_i32_0 = arith.constant 0 : i32
    return %arg0, %c0_i32, %arg1 : i32, i32, i32
  }
}

</mosaic_0001>

<bundles_post_ra>
// kernel: single_scale_encoder_decoder_counting.1
= control target key start
LH: loop header
LB: loop body
LE: loop exit
PB: predicated region body
PF: predicated region fallthrough
CT: control target
= control target key end

     0   :  { %s696_s23 = smov 0   ;;  %s698_s24 = smov 0   ;;  %s769_s0 = inlined_call_operand.vmem [shape: bf16[2,32,128], index: 0, kind: input, shape index: {}]   ;;  %s770_s1 = inlined_call_operand.vmem [shape: bf16[32,32], index: 1, kind: input, shape index: {}]   ;;  %s771_s2 = inlined_call_operand.vmem [shape: f32[32,1], index: 2, kind: input, shape index: {}]   ;;  %s772_s3 = inlined_call_operand.vmem [shape: f32[2,32,1], index: 3, kind: input, shape index: {}]   ;;  %s773_s4 = inlined_call_operand.vmem [shape: f32[32,1], index: 4, kind: input, shape index: {}]   ;;  %s774_s5 = inlined_call_operand.<no memory space> [shape: f32[1], index: 5, kind: input, shape index: {}]   ;;  %s775_s6 = inlined_call_operand.vmem [shape: f32[2,1,128], index: 6, kind: output, shape index: {}]  }
   0x1   :  { %11 = sst [smem:[#allocation2]] %s774_s5  ;;  %s700_s25 = smov 0  }
   0x2 LB: > { %s29_s5 = sadd.s32 1, %s651_s24  ;;  %p575_p0 = scmp.ge.s32.totalorder %s655_s25, 1  ;;  %s655_s25 = sphi %s700_s25, %s17_s25   ;;  %s651_s24 = sphi %s698_s24, %s777_s24   ;;  %s647_s23 = sphi %s696_s23, %s776_s23  }
   0x3   : > { %p31_p1 = scmp.ge.s32.totalorder %s29_s5, 2  ;;  %p242_p2 = scmp.lt.s32.totalorder %s655_s25, 3 }
   0x5   : > { %s779_s5 = smov (%p31_p1, %s29_s5), 0  ;;  %p243_p3 = pnand %p575_p0, %p242_p2 }
   0x6   : > { %p281_p4 = scmp.lt.s32.totalorder (!%p243_p3), %s647_s23, 1  ;;  %v631_v0 = vld [vmem:[%s770_s1] sm:$0xff] (!%p243_p3)   ;;  %vm364_vm0 = vcmask (!%p243_p3), 261120   ;;  %v307_v2 = vld [vmem:[%s771_s2 + $0x10] sm:$0xff] (!%p243_p3)  ;;  %v657_v3 = vmov (!%p243_p3), 0   ;;  %v306_v4 = vld [vmem:[%s771_s2 + $0x8] sm:$0xff] (!%p243_p3) }
   0x7   : > { %246 = sbr.rel (%p243_p3) target bundleno = 272 (0x110), region = 44  ;;  %598 = vmatprep.mubr.msk.bf16.mxu0 (!%p243_p3), %vm364_vm0, %v631_v0  ;;  %v305_v1 = vld [vmem:[%s771_s2] sm:$0xff] (!%p243_p3)  ;;  %627 = vset.pattern.permute.xlu0 (!%p243_p3), %v657_v3  ;;  %v308_v5 = vld [vmem:[%s771_s2 + $0x18] sm:$0xff] (!%p243_p3)  ;;  %v632_v10 = vld [vmem:[%s770_s1 + $0x8] sm:$0xff] (!%p243_p3)   ;;  %s317_s9 = sld [smem:[#allocation2]] (!%p243_p3) }
   0x8   : > { %628 = vset.pattern.permute.xlu1 (!%p243_p3), %v657_v3  ;;  %324 = vperm.xlu0 (!%p243_p3), %627, %v305_v1   ;;  %v313_v13 = vld [vmem:[%s773_s4] sm:$0xff] (!%p243_p3)  ;;  %v314_v14 = vld [vmem:[%s773_s4 + $0x8] sm:$0xff] (!%p243_p3)  ;;  %v315_v15 = vld [vmem:[%s773_s4 + $0x10] sm:$0xff] (!%p243_p3) }
   0x9   : > { %334 = vperm.xlu1 (!%p243_p3), %628, %v307_v2   ;;  %v316_v16 = vld [vmem:[%s773_s4 + $0x18] sm:$0xff] (!%p243_p3) }
   0xc   : > { %329 = vperm.xlu0 (!%p243_p3), %627, %v306_v4  }
   0xd   : > { %339 = vperm.xlu1 (!%p243_p3), %628, %v308_v5   ;;  %v485_v61 = vstv (!%p243_p3), %s317_s9 }
   0xe   : > { %s781_s23 = smov (!%p281_p4, %s647_s23), 1 }
   0xf   : > { %s588_s8 = sshll.u32 %s781_s23, 4  ;;  %s589_s16 = sshll.u32 %s781_s23, 5 }
  0x10   : > { %s288_s11 = scalar_lea.vmem %s769_s0, %s588_s8  ;;  %s293_s19 = scalar_lea.vmem %s772_s3, %s589_s16 }
  0x11   : > { %v629_v6 = vld [vmem:[%s288_s11] sm:$0xff]   ;;  %v630_v7 = vld [vmem:[%s288_s11 + $0x8] sm:$0xff]   ;;  %v311_v11 = vld [vmem:[%s293_s19 + $0x10] sm:$0xff]  ;;  %s299_s12 = scalar_lea.vmem %s775_s6, %s781_s23 }
  0x12   : > { %594 = vmatprep.subr.bf16.mxu0 %v629_v6  ;;  %v309_v8 = vld [vmem:[%s293_s19] sm:$0xff]  ;;  %v310_v9 = vld [vmem:[%s293_s19 + $0x8] sm:$0xff]  ;;  %v312_v12 = vld [vmem:[%s293_s19 + $0x18] sm:$0xff] }
  0x13   : > { %595 = vmatpush3.bf16.msra.mxu0 %v629_v6  ;;  %426 = vperm.xlu0 %627, %v309_v8  }
  0x14   : > { %596 = vmatprep.subr.bf16.mxu0 %v630_v7  ;;  %431 = vperm.xlu1 %628, %v310_v9  }
  0x17   : > { %597 = vmatpush3.bf16.msra.mxu0 %v630_v7  ;;  %436 = vperm.xlu0 %627, %v311_v11  }
  0x18   : > { %441 = vperm.xlu1 %628, %v312_v12  }
  0x1a   : > { %599 = vmatmul.mubr.msk.bf16.vlgmr.msra.gmra.mrb[0].mxu0 %vm364_vm0, %v632_v10 }
  0x1b   : > { %454 = vperm.xlu0 %627, %v313_v13  }
  0x1c   : > { %459 = vperm.xlu1 %628, %v314_v14  }
  0x1f   : > { %464 = vperm.xlu0 %627, %v315_v15  }
  0x20   : > { %469 = vperm.xlu1 %628, %v316_v16  }
  0x87   : > { %v325_v17 = vpop.permute.xlu0 %324 }
  0x88   : > { %v335_v18 = vpop.permute.xlu1 %334 }
  0x8b   : > { %v330_v19 = vpop.permute.xlu0 %329 }
  0x8c   : > { %v340_v20 = vpop.permute.xlu1 %339 }
  0x92   : > { %v427_v21 = vpop.permute.xlu0 %426 }
  0x93   : > { %v432_v22 = vpop.permute.xlu1 %431 }
  0x96   : > { %v437_v24 = vpop.permute.xlu0 %436 }
  0x97   : > { %v442_v29 = vpop.permute.xlu1 %441 }
  0x9a   : > { %v455_v39 = vpop.permute.xlu0 %454 }
  0x9b   : > { %v460_v43 = vpop.permute.xlu1 %459 }
  0x9e   : > { %v465_v49 = vpop.permute.xlu0 %464 }
  0x9f   : > { %v470_v52 = vpop.permute.xlu1 %469 }
  0xed   : > { %v600_v23 = vpop.f32.mrb[0].mxu0 }
  0xee   : > { %v414_v25 = vadd.f32 %v600_v23, %v335_v18  ;;  %v405_v26 = vpop.f32.mrb[1].mxu0 }
  0xef   : > { %v406_v27 = vadd.f32 %v405_v26, %v325_v17  ;;  %v601_v28 = vpop.f32.mrb[2].mxu0 }
  0xf0   : > { %v422_v30 = vmax.f32 %v414_v25, 0.0  ;;  %v417_v31 = vadd.f32 %v601_v28, %v340_v20  ;;  %v408_v32 = vpop.f32.mrb[3].mxu0 }
  0xf1   : > { %v420_v33 = vmax.f32 %v406_v27, 0.0  ;;  %v409_v34 = vadd.f32 %v408_v32, %v330_v19 }
  0xf2   : > { %v423_v35 = vmax.f32 %v417_v31, 0.0  ;;  %v446_v36 = vadd.f32 %v437_v24, %v422_v30 }
  0xf3   : > { %v444_v37 = vadd.f32 %v427_v21, %v420_v33  ;;  %v421_v38 = vmax.f32 %v409_v34, 0.0 }
  0xf4   : > { %v447_v41 = vadd.f32 %v442_v29, %v423_v35  ;;  %v450_v44 = vmax.f32 %v446_v36, 0.0 }
  0xf5   : > { %v448_v40 = vmax.f32 %v444_v37, 0.0  ;;  %v445_v42 = vadd.f32 %v432_v22, %v421_v38 }
  0xf6   : > { %v451_v47 = vmax.f32 %v447_v41, 0.0  ;;  %v474_v50 = vmul.f32 %v465_v49, %v450_v44 }
  0xf7   : > { %v449_v45 = vmax.f32 %v445_v42, 0.0  ;;  %v472_v46 = vmul.f32 %v455_v39, %v448_v40 }
  0xf8   : > { %v475_v53 = vmul.f32 %v470_v52, %v451_v47 }
  0xf9   : > { %v473_v48 = vmul.f32 %v460_v43, %v449_v45 }
  0xfb   : > { %v476_v51 = vadd.f32 %v473_v48, %v472_v46 }
  0xfd   : > { %v477_v54 = vadd.f32 %v476_v51, %v474_v50 }
  0xff   : > { %v478_v55 = vadd.f32 %v477_v54, %v475_v53 }
 0x101   : > { %v479_v56 = vrot.slane %v478_v55, 4 }
 0x103   : > { %v480_v57 = vadd.f32 %v479_v56, %v478_v55 }
 0x105   : > { %v481_v58 = vrot.slane %v480_v57, 2 }
 0x107   : > { %v482_v59 = vadd.f32 %v481_v58, %v480_v57 }
 0x109   : > { %v483_v60 = vrot.slane %v482_v59, 1 }
 0x10b   : > { %v484_v62 = vadd.f32 %v483_v60, %v482_v59 }
 0x10d   : > { %v486_v63 = vadd.f32 %v485_v61, %v484_v62 }
 0x10f   : > { %487 = vst [vmem:[%s299_s12] sm:$0x1] %v486_v63 }
 0x110 PF: > { %s17_s25 = sadd.s32 1, %s655_s25   ;;  %s776_s23 = smov %s651_s24 }
 0x111   : > { %p14_p5 = scmp.ge.s32.totalorder %s17_s25, 4   ;;  %s777_s24 = smov %s779_s5 }
 0x113   :  { %16 = sbr.rel (!%p14_p5) target bundleno = 2 (0x2), region = 77 }

</bundles_post_ra>
